<compile_context>
chip_gen: v7x
topology: tpu7x:2x2x1
jax: 0.10.0
libtpu: 0.0.40
codegen_flags: <defaults>
</compile_context>

<pallas_src>
import math

import jax
import jax.numpy as jnp
from jax.experimental import pallas as pl
from jax.experimental.pallas import tpu as pltpu


def _round_up(x, m):
    return (x + m - 1) // m * m


def _cdiv(a, b):
    return -(-a // b)


def _gmu_kernel(x1_ref, x2_ref, wf1_ref, wf2_ref, bf_ref, out_ref):
    d_out = out_ref.shape[-1] - 1
    mm_dtype = wf1_ref.dtype

    # bf16 inputs pass straight to the MXU; f32 inputs are cast here.
    x1 = x1_ref[...]
    x2 = x2_ref[...]
    if x1.dtype != mm_dtype:
        x1 = x1.astype(mm_dtype)
    if x2.dtype != mm_dtype:
        x2 = x2.astype(mm_dtype)

    # Fused block-diagonal matmul into one (TILE, 2*D+1) f32 slab:
    #   cols [0, D)      -> pre-activation of transform_x1
    #   cols [D, 2D)     -> pre-activation of transform_x2
    #   col  2D          -> (l0 - l1) / 2   (gate logit difference, pre-scaled)
    r = (jnp.dot(x1, wf1_ref[...], preferred_element_type=jnp.float32)
         + jnp.dot(x2, wf2_ref[...], preferred_element_type=jnp.float32)
         + bf_ref[...])

    # One lane-dense tanh over the whole slab (single EUP pass).
    t = jnp.tanh(r)
    h1 = t[:, :d_out]
    h2 = t[:, d_out:2 * d_out]
    g1 = 0.5 * (1.0 + t[:, 2 * d_out:])        # sigmoid(l0 - l1) == softmax[..0]

    fused = g1 * h1 + (1.0 - g1) * h2

    out_ref[:, :d_out] = fused.astype(out_ref.dtype)
    out_ref[:, d_out:] = g1.astype(out_ref.dtype)


def prepare_params(params, dim_x1, matmul_dtype=jnp.bfloat16):
    """One-time parameter packing (hoisted out of the forward pass).

    Builds block-diagonal fused weights with the gate weight difference
    (wg[:,0]-wg[:,1]), pre-scaled by 0.5, as the last output column, and a
    single fused bias row [b1 | b2 | 0.5*(bg0-bg1)].
    """
    w1, b1 = params["w1"], params["b1"]
    w2, b2 = params["w2"], params["b2"]
    wg, bg = params["wg"], params["bg"]
    out_dim = w1.shape[1]
    dim_x2 = w2.shape[0]

    wg_half = 0.5 * (wg[:, 0] - wg[:, 1]).astype(jnp.float32)
    bg_half = 0.5 * (bg[0] - bg[1]).astype(jnp.float32)

    z1 = jnp.zeros((dim_x1, out_dim), jnp.float32)
    z2 = jnp.zeros((dim_x2, out_dim), jnp.float32)
    wf1 = jnp.concatenate(
        [w1.astype(jnp.float32), z1, wg_half[:dim_x1, None]], axis=1
    ).astype(matmul_dtype)
    wf2 = jnp.concatenate(
        [z2, w2.astype(jnp.float32), wg_half[dim_x1:, None]], axis=1
    ).astype(matmul_dtype)
    bf = jnp.concatenate([b1.astype(jnp.float32), b2.astype(jnp.float32),
                          bg_half[None]])[None, :]

    return dict(wf1=wf1, wf2=wf2, bf=bf, out_dim=out_dim,
                dim_x1=dim_x1, dim_x2=dim_x2)


def _pick_tile(n, tile_n, row_bytes, *, target_grid=4, vmem_budget=36 << 20):
    """Row tile: multiple of 8 sublanes, <= padded n, keeps the grid at
    ~target_grid steps when n allows (v7x megacore balance), and keeps the
    double-buffered lane-padded working set under vmem_budget (v7x: 64 MiB)."""
    n8 = _round_up(max(n, 1), 8)
    tile = min(_round_up(tile_n, 8), n8)
    balanced = max(_round_up(_cdiv(n8, target_grid), 8), 8)
    tile = min(tile, balanced)
    max_rows = max((vmem_budget // (2 * row_bytes)) // 8 * 8, 8)
    return max(min(tile, max_rows), 8)


def two_way_gmu(x1, x2, prep, *, tile_n=4096):
    """Pallas forward of TwoWayGMU (eval mode).

    Args:
      x1: [..., dim_x1] float32 or bfloat16
      x2: [..., dim_x2] float32 or bfloat16 (same leading shape as x1)
      prep: output of prepare_params().
      tile_n: requested rows per grid step (auto-capped; default 4096).
    Returns:
      h_fusion: [..., out_dim], gates: [..., 2] (sums to 1 along last dim)
    """
    dim_x1, dim_x2 = prep["dim_x1"], prep["dim_x2"]
    out_dim = prep["out_dim"]
    wf1, wf2, bf = prep["wf1"], prep["wf2"], prep["bf"]
    assert x1.shape[-1] == dim_x1 and x2.shape[-1] == dim_x2
    lead = x1.shape[:-1]
    assert x2.shape[:-1] == lead
    out_dtype = x1.dtype

    n = math.prod(lead)
    x1f = x1.reshape(n, dim_x1)
    x2f = x2.reshape(n, dim_x2)

    # Lane-padded (to 128) per-row VMEM bytes -> realistic tile/VMEM accounting.
    lane = lambda c: _round_up(c, 128)
    row_bytes = (lane(dim_x1) * x1f.dtype.itemsize
                 + lane(dim_x2) * x2f.dtype.itemsize
                 + lane(out_dim + 1) * jnp.dtype(out_dtype).itemsize)

    tile = _pick_tile(n, tile_n, row_bytes)
    n_pad = _round_up(n, tile)
    if n_pad != n:
        x1f = jnp.pad(x1f, ((0, n_pad - n), (0, 0)))
        x2f = jnp.pad(x2f, ((0, n_pad - n), (0, 0)))
    grid = (n_pad // tile,)

    resident = lambda shape: pl.BlockSpec(shape, lambda i: (0, 0))

    w_bytes = ((wf1.size + wf2.size) * jnp.dtype(wf1.dtype).itemsize
               + bf.size * jnp.dtype(bf.dtype).itemsize)
    cost = pl.CostEstimate(
        flops=2 * n_pad * (dim_x1 + dim_x2) * (2 * out_dim + 1) + 6 * n_pad * out_dim,
        transcendentals=n_pad * (2 * out_dim + 1),
        bytes_accessed=(n_pad * (dim_x1 * x1f.dtype.itemsize
                                 + dim_x2 * x2f.dtype.itemsize
                                 + (out_dim + 1) * jnp.dtype(out_dtype).itemsize)
                        + w_bytes),
    )

    # Double-buffered lane-padded blocks + slack; safe under v7x's 64 MiB.
    vmem_limit = int(min(max(2 * tile * row_bytes + (4 << 20), 16 << 20), 48 << 20))

    out = pl.pallas_call(
        _gmu_kernel,
        out_shape=jax.ShapeDtypeStruct((n_pad, out_dim + 1), out_dtype),
        grid_spec=pltpu.PrefetchScalarGridSpec(
            num_scalar_prefetch=0,
            grid=grid,
            in_specs=[
                pl.BlockSpec((tile, dim_x1), lambda i: (i, 0)),
                pl.BlockSpec((tile, dim_x2), lambda i: (i, 0)),
                resident(wf1.shape), resident(wf2.shape), resident(bf.shape),
            ],
            out_specs=pl.BlockSpec((tile, out_dim + 1), lambda i: (i, 0)),
        ),
        compiler_params=pltpu.CompilerParams(
            dimension_semantics=("parallel",),          # rows are independent
            vmem_limit_bytes=vmem_limit,
        ),
        cost_estimate=cost,
    )(x1f, x2f, wf1, wf2, bf)

    h_fusion = out[:n, :out_dim].reshape(*lead, out_dim)
    g1 = out[:n, out_dim:].astype(jnp.float32)
    gates = jnp.concatenate([g1, 1.0 - g1], axis=-1).astype(out_dtype)
    gates = gates.reshape(*lead, 2)
    return h_fusion, gates


def init_params(key, dim_x1, dim_x2, output_dim):
    """Deterministic init matching torch.nn.Linear shapes (weights stored
    transposed: [in, out]); gate bias set to [1., 1.] as in the module."""
    k1, k2, k3, k4, k5 = jax.random.split(key, 5)

    def lin_init(kw, kb, fan_in, fan_out):
        bound = 1.0 / jnp.sqrt(fan_in)
        w = jax.random.uniform(kw, (fan_in, fan_out), jnp.float32, -bound, bound)
        b = jax.random.uniform(kb, (fan_out,), jnp.float32, -bound, bound)
        return w, b

    w1, b1 = lin_init(k1, k2, dim_x1, output_dim)
    w2, b2 = lin_init(k3, k4, dim_x2, output_dim)
    wg, _ = lin_init(k5, k5, dim_x1 + dim_x2, 2)
    bg = jnp.array([1.0, 1.0], dtype=jnp.float32)
    return dict(w1=w1, b1=b1, w2=w2, b2=b2, wg=wg, bg=bg)


def _reference_f32(x1, x2, params):
    """Pure-f32 softmax reference = the original module's math (eval mode)."""
    x1 = x1.astype(jnp.float32)
    x2 = x2.astype(jnp.float32)
    h1 = jnp.tanh(x1 @ params["w1"] + params["b1"])
    h2 = jnp.tanh(x2 @ params["w2"] + params["b2"])
    combined = jnp.concatenate([x1, x2], axis=-1)
    gates = jax.nn.softmax(combined @ params["wg"] + params["bg"], axis=-1)
    return gates[..., 0:1] * h1 + gates[..., 1:2] * h2, gates


def _reference_matched(x1, x2, prep):
    """Reference mirroring the kernel's exact math (bf16 MXU operands, f32
    accumulation, fused slab, single tanh, sigmoid-of-half-logit-diff gate)."""
    mmdt = prep["wf1"].dtype
    D = prep["out_dim"]
    r = (jnp.dot(x1.astype(mmdt), prep["wf1"], preferred_element_type=jnp.float32)
         + jnp.dot(x2.astype(mmdt), prep["wf2"], preferred_element_type=jnp.float32)
         + prep["bf"])
    t = jnp.tanh(r)
    h1, h2 = t[..., :D], t[..., D:2 * D]
    g1 = 0.5 * (1.0 + t[..., 2 * D:])
    return g1 * h1 + (1.0 - g1) * h2, jnp.concatenate([g1, 1.0 - g1], axis=-1)


if __name__ == "__main__":
    batch, seq = 2, 8
    dim_x1, dim_x2, output_dim = 32, 48, 32

    key = jax.random.PRNGKey(0)
    kx1, kx2, kp = jax.random.split(key, 3)
    x1 = jax.random.normal(kx1, (batch, seq, dim_x1), dtype=jnp.float32)
    x2 = jax.random.normal(kx2, (batch, seq, dim_x2), dtype=jnp.float32)
    params = init_params(kp, dim_x1, dim_x2, output_dim)
    prep = prepare_params(params, dim_x1)   # one-time packing, hoisted

    h_fusion, gates = two_way_gmu(x1, x2, prep)
    jax.block_until_ready((h_fusion, gates))

    assert h_fusion.shape == (batch, seq, output_dim)
    assert gates.shape == (batch, seq, 2)

    # 1) tight check vs a reference that mirrors the kernel's MXU precision
    h_m, g_m = _reference_matched(x1, x2, prep)
    assert jnp.allclose(h_fusion, h_m, atol=1e-4, rtol=1e-4)
    assert jnp.allclose(gates, g_m, atol=1e-4, rtol=1e-4)

    # 2) semantics check vs the pure-f32 softmax module math (tolerance covers
    #    bf16 MXU operands)
    h_f, g_f = _reference_f32(x1, x2, params)
    assert jnp.allclose(h_fusion, h_f, atol=5e-2, rtol=5e-2)
    assert jnp.allclose(gates, g_f, atol=2e-2, rtol=2e-2)
    assert jnp.allclose(jnp.sum(gates, axis=-1), 1.0, atol=1e-6)

    # 3) multi-tile grid + ragged-n padding path (tile auto-balanced to >=4 steps)
    n2 = 300
    kx3, kx4 = jax.random.split(kx1)
    y1 = jax.random.normal(kx3, (n2, dim_x1), dtype=jnp.float32)
    y2 = jax.random.normal(kx4, (n2, dim_x2), dtype=jnp.float32)
    h2, g2 = two_way_gmu(y1, y2, prep, tile_n=128)
    jax.block_until_ready((h2, g2))
    h2_m, g2_m = _reference_matched(y1, y2, prep)
    assert h2.shape == (n2, output_dim) and g2.shape == (n2, 2)
    assert jnp.allclose(h2, h2_m, atol=1e-4, rtol=1e-4)
    assert jnp.allclose(g2, g2_m, atol=1e-4, rtol=1e-4)

    # 4) bf16 activations end-to-end (halves HBM traffic; MXU math unchanged)
    x1b = x1.astype(jnp.bfloat16)
    x2b = x2.astype(jnp.bfloat16)
    hb, gb = two_way_gmu(x1b, x2b, prep)
    jax.block_until_ready((hb, gb))
    assert hb.dtype == jnp.bfloat16 and gb.dtype == jnp.bfloat16
    hb_m, gb_m = _reference_matched(x1b, x2b, prep)
    assert jnp.allclose(hb.astype(jnp.float32), hb_m, atol=2e-2, rtol=2e-2)
    assert jnp.allclose(gb.astype(jnp.float32), gb_m, atol=2e-2, rtol=2e-2)

    print("KERNEL_OK")
</pallas_src>

<mosaic_0001>
module attributes {stable_mosaic.version = 11 : i64} {
  func.func @_gmu_kernel(%arg0: i32, %arg1: memref<8x32xf32, #tpu.memory_space<vmem>>, %arg2: memref<8x48xf32, #tpu.memory_space<vmem>>, %arg3: memref<32x65xbf16, #tpu.memory_space<vmem>>, %arg4: memref<48x65xbf16, #tpu.memory_space<vmem>>, %arg5: memref<1x65xf32, #tpu.memory_space<vmem>>, %arg6: memref<8x33xf32, #tpu.memory_space<vmem>>) attributes {dimension_semantics = [#tpu.dimension_semantics<parallel>], iteration_bounds = array<i64: 2>, scalar_prefetch = 0 : i64, scratch_operands = 0 : i64, tpu.core_type = #tpu.core_type<tc>, window_params = [{transform_indices = @transform_0, window_bounds = array<i64: 8, 32>}, {transform_indices = @transform_1, window_bounds = array<i64: 8, 48>}, {pipeline_mode = #tpu.pipeline_mode<synchronous>, transform_indices = @transform_2, window_bounds = array<i64: 32, 65>}, {pipeline_mode = #tpu.pipeline_mode<synchronous>, transform_indices = @transform_3, window_bounds = array<i64: 48, 65>}, {pipeline_mode = #tpu.pipeline_mode<synchronous>, transform_indices = @transform_4, window_bounds = array<i64: 1, 65>}, {transform_indices = @transform_5, window_bounds = array<i64: 8, 33>}]} {
    %c0 = arith.constant 0 : index
    %c0_0 = arith.constant 0 : index
    %0 = vector.load %arg1[%c0, %c0_0] : memref<8x32xf32, #tpu.memory_space<vmem>>, vector<8x32xf32>
    %c0_1 = arith.constant 0 : index
    %c0_2 = arith.constant 0 : index
    %1 = vector.load %arg2[%c0_1, %c0_2] : memref<8x48xf32, #tpu.memory_space<vmem>>, vector<8x48xf32>
    %2 = arith.truncf %0 : vector<8x32xf32> to vector<8x32xbf16>
    %3 = arith.truncf %1 : vector<8x48xf32> to vector<8x48xbf16>
    %c0_3 = arith.constant 0 : index
    %c0_4 = arith.constant 0 : index
    %4 = vector.load %arg3[%c0_3, %c0_4] : memref<32x65xbf16, #tpu.memory_space<vmem>>, vector<32x65xbf16>
    %cst = arith.constant dense<0.000000e+00> : vector<8x65xf32>
    %5 = tpu.matmul %2, %4, %cst {dimension_numbers = #tpu.dot_dimension_numbers<[1], [0], [0], [1], [0, 0, 1, 1], [], []>} : vector<8x32xbf16>, vector<32x65xbf16>, vector<8x65xf32> -> vector<8x65xf32>
    %c0_5 = arith.constant 0 : index
    %c0_6 = arith.constant 0 : index
    %6 = vector.load %arg4[%c0_5, %c0_6] : memref<48x65xbf16, #tpu.memory_space<vmem>>, vector<48x65xbf16>
    %cst_7 = arith.constant dense<0.000000e+00> : vector<8x65xf32>
    %7 = tpu.matmul %3, %6, %cst_7 {dimension_numbers = #tpu.dot_dimension_numbers<[1], [0], [0], [1], [0, 0, 1, 1], [], []>} : vector<8x48xbf16>, vector<48x65xbf16>, vector<8x65xf32> -> vector<8x65xf32>
    %8 = arith.addf %5, %7 : vector<8x65xf32>
    %c0_8 = arith.constant 0 : index
    %c0_9 = arith.constant 0 : index
    %9 = vector.load %arg5[%c0_8, %c0_9] : memref<1x65xf32, #tpu.memory_space<vmem>>, vector<1x65xf32>
    %10 = vector.broadcast %9 : vector<1x65xf32> to vector<8x65xf32>
    %11 = arith.addf %8, %10 : vector<8x65xf32>
    %12 = math.tanh %11 : vector<8x65xf32>
    %13 = vector.extract_strided_slice %12 {offsets = [0, 0], sizes = [8, 32], strides = [1, 1]} : vector<8x65xf32> to vector<8x32xf32>
    %14 = vector.extract_strided_slice %12 {offsets = [0, 32], sizes = [8, 32], strides = [1, 1]} : vector<8x65xf32> to vector<8x32xf32>
    %15 = vector.extract_strided_slice %12 {offsets = [0, 64], sizes = [8, 1], strides = [1, 1]} : vector<8x65xf32> to vector<8x1xf32>
    %cst_10 = arith.constant 1.000000e+00 : f32
    %16 = vector.broadcast %cst_10 : f32 to vector<8x1xf32>
    %17 = arith.addf %16, %15 : vector<8x1xf32>
    %cst_11 = arith.constant 5.000000e-01 : f32
    %18 = vector.broadcast %cst_11 : f32 to vector<8x1xf32>
    %19 = arith.mulf %18, %17 : vector<8x1xf32>
    %20 = vector.broadcast %19 : vector<8x1xf32> to vector<8x32xf32>
    %21 = arith.mulf %20, %13 : vector<8x32xf32>
    %cst_12 = arith.constant 1.000000e+00 : f32
    %22 = vector.broadcast %cst_12 : f32 to vector<8x1xf32>
    %23 = arith.subf %22, %19 : vector<8x1xf32>
    %24 = vector.broadcast %23 : vector<8x1xf32> to vector<8x32xf32>
    %25 = arith.mulf %24, %14 : vector<8x32xf32>
    %26 = arith.addf %21, %25 : vector<8x32xf32>
    %c0_13 = arith.constant 0 : index
    %c0_14 = arith.constant 0 : index
    %27 = vector.load %arg6[%c0_13, %c0_14] : memref<8x33xf32, #tpu.memory_space<vmem>>, vector<8x32xf32>
    tpu.vector_store %arg6[%c0_13, %c0_14], %26 {strides = array<i32>} : memref<8x33xf32, #tpu.memory_space<vmem>>, vector<8x32xf32>,
    %c0_15 = arith.constant 0 : index
    %c32 = arith.constant 32 : index
    %28 = vector.load %arg6[%c0_15, %c32] : memref<8x33xf32, #tpu.memory_space<vmem>>, vector<8x1xf32>
    tpu.vector_store %arg6[%c0_15, %c32], %19 {strides = array<i32>} : memref<8x33xf32, #tpu.memory_space<vmem>>, vector<8x1xf32>,
    return
  }
  func.func @transform_0(%arg0: i32) -> (i32, i32) {
    %c0_i32 = arith.constant 0 : i32
    %c0_i32_0 = arith.constant 0 : i32
    return %arg0, %c0_i32 : i32, i32
  }
  func.func @transform_1(%arg0: i32) -> (i32, i32) {
    %c0_i32 = arith.constant 0 : i32
    %c0_i32_0 = arith.constant 0 : i32
    return %arg0, %c0_i32 : i32, i32
  }
  func.func @transform_2(%arg0: i32) -> (i32, i32) {
    %c0_i32 = arith.constant 0 : i32
    %c0_i32_0 = arith.constant 0 : i32
    %c0_i32_1 = arith.constant 0 : i32
    return %c0_i32, %c0_i32_0 : i32, i32
  }
  func.func @transform_3(%arg0: i32) -> (i32, i32) {
    %c0_i32 = arith.constant 0 : i32
    %c0_i32_0 = arith.constant 0 : i32
    %c0_i32_1 = arith.constant 0 : i32
    return %c0_i32, %c0_i32_0 : i32, i32
  }
  func.func @transform_4(%arg0: i32) -> (i32, i32) {
    %c0_i32 = arith.constant 0 : i32
    %c0_i32_0 = arith.constant 0 : i32
    %c0_i32_1 = arith.constant 0 : i32
    return %c0_i32, %c0_i32_0 : i32, i32
  }
  func.func @transform_5(%arg0: i32) -> (i32, i32) {
    %c0_i32 = arith.constant 0 : i32
    %c0_i32_0 = arith.constant 0 : i32
    return %arg0, %c0_i32 : i32, i32
  }
}

</mosaic_0001>

<bundles_post_ra>
// kernel: tpu_custom_call.1
= control target key start
LH: loop header
LB: loop body
LE: loop exit
PB: predicated region body
PF: predicated region fallthrough
CT: control target
= control target key end

     0   :  { %s1254_s0 = inlined_call_operand.hbm [shape: f32[16,32], index: 0, kind: input, shape index: {}]   ;;  %s1255_s1 = inlined_call_operand.hbm [shape: f32[16,48], index: 1, kind: input, shape index: {}]   ;;  %s1256_s2 = inlined_call_operand.hbm [shape: bf16[32,65], index: 2, kind: input, shape index: {}]   ;;  %s1257_s3 = inlined_call_operand.hbm [shape: bf16[48,65], index: 3, kind: input, shape index: {}]   ;;  %s1258_s4 = inlined_call_operand.vmem [shape: f32[1,65], index: 4, kind: input, shape index: {}]   ;;  %s1259_s5 = inlined_call_operand.hbm [shape: f32[16,33], index: 5, kind: output, shape index: {}]  }
   0x1   :  { %1264 = sst [smem:[#allocation16_spill]] %s1256_s2 }
   0x2   :  { %1265 = sst [smem:[#allocation17_spill]] %s1257_s3 }
   0x3   :  { %10 = vsyncpa [#allocation3], 0 }
   0x4   :  { %12 = vsyncpa [#allocation3 + $0x1], 0 }
   0x5   :  { %13 = vsyncpa [#allocation6], 0 }
   0x6   :  { %15 = vsyncpa [#allocation6 + $0x1], 0 }
   0x7   :  { %16 = vsyncpa [#allocation9], 0 }
   0x8   :  { %17 = vsyncpa [#allocation4], 0 }
   0x9   :  { %19 = vsyncpa [#allocation4 + $0x1], 0  ;;  %s975_s18 = smov 0   ;;  %s977_s19 = smov 0  }
   0xa   :  { %s979_s20 = smov 0   ;;  %s981_s21 = smov 0  }
   0xb LB: > { %s996_s22 = sadd.s32 4294967295, %s932_s21   ;;  %s600_s23 = sadd.s32 4294967294, %s932_s21   ;;  %s932_s21 = sphi %s981_s21, %s1287_s21   ;;  %s928_s20 = sphi %s979_s20, %s1286_s20   ;;  %s924_s19 = sphi %s977_s19, %s1285_s19   ;;  %s920_s18 = sphi %s975_s18, %s1284_s18  }
   0xc   : > { %p45_p0 = scmp.ne.s32.totalorder %s924_s19, %s920_s18  ;;  %p1260_p1 = scmp.eq.s32.totalorder %s996_s22, 0 }
   0xd   : > { %p164_p3 = scmp.eq.s32.totalorder %s600_s23, 1  ;;  %p601_p5 = scmp.ge.s32.totalorder %s932_s21, 1 }
   0xe   : > { %p1005_p4 = por %p1260_p1, %p45_p0  ;;  %p171_p7 = scmp.lt.s32.totalorder %s932_s21, 3 }
   0xf   : > { %p1010_p6 = por %p164_p3, %p45_p0  ;;  %s934_s27 = smov [#allocation7]  }
  0x10   : > { %s1266_s24 = scalar_select %p1005_p4, 1, 0 }
  0x11   : > { %s1267_s25 = scalar_select %p1010_p6, 1, 0 }
  0x12   : > { %p1015_p8 = pnand %p601_p5, %p171_p7  ;;  %s183_s28 = sshll.u32 %s934_s27, 4  ;;  %s1019_s28 = int_to_ptr.vmem [resolvable:$true] %s183_s28 }
  0x13   : > { %s935_s30 = smov [#allocation8]   ;;  %s1270_s2 = sld [smem:[#allocation16_spill]] }
  0x14   : > { %s1268_s26 = scalar_select %p1015_p8, 1, 0 }
  0x15   : > { %p666_p9 = pneg %p1015_p8  ;;  %s196_s6 = sshll.u32 %s935_s30, 4  ;;  %s1030_s6 = int_to_ptr.vmem [resolvable:$true] %s196_s6 }
  0x17   : > { %p1026_p11 = pnand %p666_p9, %p1260_p1 }
  0x19   : > { %s738_s9 = scalar_lea.hbm %s1270_s2, 256  ;;  %p740_p13 = pneg %p1026_p11 }
  0x1a   : > { %p739_p12 = scmp.ne.s32.totalorder %s1270_s2, %s738_s9  ;;  %p745_p5 = scmp.lt.u32.totalorder %s738_s9, %s1270_s2 }
  0x1c   : > { %p741_p0 = pnand %p740_p13, %p739_p12 }
  0x1e   : > { %p742_p3 = pneg %p741_p0 }
  0x20   : > { %p747_p7 = pnand %p745_p5, %p742_p3 }
  0x22   : > { %750 = shalt.err (!%p747_p7)
}
  0x23   : > { %s751_s14 = scalar_lea.vmem %s1019_s28, 256  ;;  %p759_p2 = scmp.lt.s32.totalorder %s1019_s28, %s1019_s28 }
  0x24   : > { %p752_p9 = scmp.ne.s32.totalorder %s1019_s28, %s751_s14  ;;  %p760_p12 = scmp.lt.s32.totalorder %s751_s14, %s751_s14 }
  0x26   : > { %p754_p10 = pnand %p752_p9, %p740_p13  ;;  %p761_p0 = por %p760_p12, %p759_p2 }
  0x28   : > { %p755_p1 = pneg %p754_p10 }
  0x2a   : > { %p762_p6 = pnand %p761_p0, %p755_p1 }
  0x2c   : > { %765 = shalt.err (!%p762_p6)
}
  0x2d   : > { %s936_s15 = smov 64   ;;  %s937_s16 = smov 4  }
  0x2e   : > { %669 = dma.hbm_to_vmem [thread:$0]  (!%p1026_p11), %s1270_s2, 256, %s1019_s28, [#allocation6], %s936_s15, %s936_s15, %s937_s16  }
  0x2f   : > { %s1271_s3 = sld [smem:[#allocation17_spill]] }
  0x35   : > { %s766_s7 = scalar_lea.hbm %s1271_s3, 384 }
  0x36   : > { %p767_p2 = scmp.ne.s32.totalorder %s1271_s3, %s766_s7  ;;  %p773_p10 = scmp.lt.u32.totalorder %s766_s7, %s1271_s3 }
  0x38   : > { %p769_p1 = pnand %p767_p2, %p740_p13 }
  0x3a   : > { %p770_p6 = pneg %p769_p1 }
  0x3c   : > { %p775_p3 = pnand %p773_p10, %p770_p6 }
  0x3e   : > { %778 = shalt.err (!%p775_p3)
}
  0x3f   : > { %s779_s28 = scalar_lea.vmem %s1030_s6, 384  ;;  %p787_p12 = scmp.lt.s32.totalorder %s1030_s6, %s1030_s6 }
  0x40   : > { %p780_p5 = scmp.ne.s32.totalorder %s1030_s6, %s779_s28  ;;  %p788_p0 = scmp.lt.s32.totalorder %s779_s28, %s779_s28 }
  0x42   : > { %p782_p7 = pnand %p780_p5, %p740_p13  ;;  %p789_p2 = por %p788_p0, %p787_p12 }
  0x44   : > { %p783_p9 = pneg %p782_p7 }
  0x46   : > { %p790_p1 = pnand %p789_p2, %p783_p9 }
  0x48   : > { %793 = shalt.err (!%p790_p1)
}
  0x49   : > { %672 = dma.hbm_to_vmem [thread:$0]  (!%p1026_p11), %s1271_s3, 384, %s1030_s6, [#allocation9], %s936_s15, %s936_s15, %s937_s16  }
  0x4a   : > { %s1085_s14 = sadd.s32 1, %s932_s21   ;;  %s32_s29 = sadd.s32 1, %s928_s20 }
  0x4b   : > { %s29_s17 = ssub.s32 %s932_s21, %s1085_s14  ;;  %p39_p13 = scmp.ne.s32.totalorder %s928_s20, %s924_s19 }
  0x4c   : > { %p30_p6 = scmp.eq.s32.totalorder %s29_s17, 0  ;;  %p40_p10 = scmp.eq.s32.totalorder %s932_s21, 0 }
  0x4d   : > { %p1272_p3 = scmp.eq.s32.totalorder %s996_s22, 1  ;;  %p686_p7 = scmp.lt.s32.totalorder %s932_s21, 2 }
  0x4e   : > { %s1101_s27 = scalar_select %p30_p6, %s928_s20, %s32_s29  }
  0x4f   : > { %p1095_p5 = por %p1272_p3, %p39_p13  ;;  %p41_p9 = por %p40_p10, %p39_p13 }
  0x50   : > { %s213_s30 = sand.u32 1, %s928_s20   ;;  %s606_s15 = sshll.u32 %s932_s21, 7 }
  0x51   : > { %s1273_s23 = scalar_select %p1095_p5, 1, 0 }
  0x52   : > { %s1104_s6 = sshll.u32 %s213_s30, 3  ;;  %s1110_s8 = scalar_lea.hbm %s1254_s0, %s606_s15 }
  0x53   : > { %s217_s9 = scalar_lea.vmem [#allocation2], %s1104_s6  ;;  %p1115_p11 = pnand %p686_p7, %p41_p9 }
  0x54   : > { %s224_s10 = sshll.u32 %s217_s9, 4  ;;  %s1122_s13 = scalar_lea.hbm %s1255_s1, %s606_s15  ;;  %s1113_s10 = int_to_ptr.vmem [resolvable:$true] %s224_s10 }
  0x55   : > { %s231_s29 = sand.u32 1, %s932_s21   ;;  %s214_s17 = scalar_lea.sflag [#allocation3], %s213_s30 }
  0x56   : > { %s794_s16 = scalar_lea.hbm %s1110_s8, 128  ;;  %p796_p0 = pneg %p1115_p11 }
  0x57   : > { %p795_p12 = scmp.ne.s32.totalorder %s1110_s8, %s794_s16  ;;  %s799_s2 = scalar_lea.hbm %s1254_s0, 256 }
  0x58   : > { %p800_p13 = scmp.lt.u32.totalorder %s1110_s8, %s1254_s0  ;;  %p801_p6 = scmp.lt.u32.totalorder %s799_s2, %s794_s16 }
  0x59   : > { %p797_p2 = pnand %p796_p0, %p795_p12  ;;  %p803_p3 = scmp.lt.u32.totalorder %s794_s16, %s1110_s8 }
  0x5a   : > { %p802_p10 = por %p801_p6, %p800_p13 }
  0x5b   : > { %p798_p1 = pneg %p797_p2 }
  0x5c   : > { %p804_p7 = por %p803_p3, %p802_p10 }
  0x5e   : > { %p805_p9 = pnand %p804_p7, %p798_p1 }
  0x60   : > { %808 = shalt.err (!%p805_p9)
}
  0x61   : > { %s809_s30 = scalar_lea.vmem %s1113_s10, 128  ;;  %s938_s15 = smov [#allocation2]  }
  0x62   : > { %p810_p12 = scmp.ne.s32.totalorder %s1113_s10, %s809_s30  ;;  %s814_s12 = sshll.u32 %s938_s15, 4  ;;  %s815_s12 = int_to_ptr.vmem [resolvable:$false] %s814_s12 }
  0x63   : > { %s816_s3 = scalar_lea.vmem %s815_s12, 256  ;;  %p817_p4 = scmp.lt.s32.totalorder %s1113_s10, %s815_s12 }
  0x64   : > { %p812_p2 = pnand %p810_p12, %p796_p0  ;;  %p818_p13 = scmp.lt.s32.totalorder %s816_s3, %s809_s30 }
  0x66   : > { %p813_p5 = pneg %p812_p2  ;;  %p819_p6 = por %p818_p13, %p817_p4 }
  0x68   : > { %p820_p10 = pnand %p819_p6, %p813_p5 }
  0x6a   : > { %823 = shalt.err (!%p820_p10)
}
  0x6b   : > { %676 = dma.hbm_to_vmem [thread:$0]  (!%p1115_p11), %s1110_s8, 128, %s1113_s10, %s214_s17  }
  0x6c   : > { %s235_s2 = scalar_lea.vmem [#allocation5], %s1104_s6  ;;  %s232_s7 = scalar_lea.sflag [#allocation6], %s231_s29 }
  0x6d   : > { %s242_s16 = sshll.u32 %s235_s2, 4  ;;  %s824_s9 = scalar_lea.hbm %s1122_s13, 128  ;;  %s243_s16 = int_to_ptr.vmem [resolvable:$true] %s242_s16 }
  0x6e   : > { %p825_p4 = scmp.ne.s32.totalorder %s1122_s13, %s824_s9  ;;  %s829_s15 = scalar_lea.hbm %s1255_s1, 256 }
  0x6f   : > { %p830_p3 = scmp.lt.u32.totalorder %s1122_s13, %s1255_s1  ;;  %p831_p7 = scmp.lt.u32.totalorder %s829_s15, %s824_s9 }
  0x70   : > { %p827_p5 = pnand %p825_p4, %p796_p0  ;;  %p833_p12 = scmp.lt.u32.totalorder %s824_s9, %s1122_s13 }
  0x71   : > { %p832_p9 = por %p831_p7, %p830_p3 }
  0x72   : > { %p828_p1 = pneg %p827_p5 }
  0x73   : > { %p834_p2 = por %p833_p12, %p832_p9 }
  0x75   : > { %p835_p13 = pnand %p834_p2, %p828_p1 }
  0x77   : > { %838 = shalt.err (!%p835_p13)
}
  0x78   : > { %s839_s6 = scalar_lea.vmem %s243_s16, 128  ;;  %s939_s8 = smov [#allocation5]  }
  0x79   : > { %p840_p6 = scmp.ne.s32.totalorder %s243_s16, %s839_s6  ;;  %s844_s10 = sshll.u32 %s939_s8, 4  ;;  %s845_s10 = int_to_ptr.vmem [resolvable:$false] %s844_s10 }
  0x7a   : > { %s846_s29 = scalar_lea.vmem %s845_s10, 256  ;;  %p847_p5 = scmp.lt.s32.totalorder %s243_s16, %s845_s10 }
  0x7b   : > { %p842_p10 = pnand %p840_p6, %p796_p0  ;;  %p848_p8 = scmp.lt.s32.totalorder %s846_s29, %s839_s6 }
  0x7d   : > { %p843_p4 = pneg %p842_p10  ;;  %p849_p3 = por %p848_p8, %p847_p5 }
  0x7f   : > { %p850_p7 = pnand %p849_p3, %p843_p4 }
  0x81   : > { %853 = shalt.err (!%p850_p7)
}
  0x82   : > { %679 = dma.hbm_to_vmem [thread:$0]  (!%p1115_p11), %s1122_s13, 128, %s243_s16, %s232_s7  }
  0x83   : > { %p1275_p1 = scmp.ne.s32.totalorder %s1268_s26, 0 }
  0x84   : > { %s1175_s17 = sand.u32 (!%p1275_p1), 1, %s924_s19   ;;  %p1276_p8 = scmp.ne.s32.totalorder (!%p1275_p1), %s1266_s24, 0 }
  0x85   : > { %251 = sbr.rel (%p1275_p1) target bundleno = 661 (0x295), region = 40  ;;  %s1178_s2 = sshll.u32 (!%p1275_p1), %s1175_s17, 3 }
  0x86   : > { %s254_s9 = scalar_lea.sflag (!%p1275_p1), [#allocation3], %s1175_s17  ;;  %s257_s28 = scalar_lea.vmem (!%p1275_p1), [#allocation2], %s1178_s2 }
  0x8c   : > { %899 = dma.done.wait (%p1276_p8), %s254_s9, 128  }
  0x8d   : > { %901 = vsyncadd (%p1276_p8), %s254_s9, 4294967168  ;;  %s262_s26 = sand.u32 1, %s996_s22   ;;  %s266_s13 = scalar_lea.vmem [#allocation5], %s1178_s2 }
  0x8e   : > { %s263_s11 = scalar_lea.sflag [#allocation6], %s262_s26 }
  0x8f   : > { %903 = dma.done.wait (%p1276_p8), %s263_s11, 128  }
  0x90   : > { %905 = vsyncadd (%p1276_p8), %s263_s11, 4294967168  ;;  %p1277_p11 = scmp.eq.s32.totalorder %s996_s22, 0 }
  0x92   : > { %907 = dma.done.wait (%p1277_p11), [#allocation6], 256   ;;  %p1278_p0 = pmov %p1277_p11 }
  0x94   : > { %909 = vsyncadd (%p1278_p0), [#allocation6], 4294967040  ;;  %p1279_p9 = pmov %p1278_p0 }
  0x95   : > { %p1280_p12 = pmov %p1278_p0 }
  0x96   : > { %911 = dma.done.wait (%p1279_p9), [#allocation9], 384  }
  0x97   : > { %913 = vsyncadd (%p1280_p12), [#allocation9], 4294966912  ;;  %v940_v0 = vmov 0.0   ;;  %vm941_vm0 = vmmov 0   ;;  %v731_v1 = vld [vmem:[#allocation8] sm:$0xff]   ;;  %v732_v2 = vld [vmem:[#allocation7] sm:$0xff]  }
  0x98   : > { %634 = vmatprep.subr.bf16.mxu0 %v940_v0  ;;  %644 = vmatprep.subr.bf16.mxu1 %v940_v0  ;;  %v733_v3 = vld [vmem:[#allocation8 + $0x8] sm:$0xff]   ;;  %v734_v4 = vld [vmem:[#allocation7 + $0x8] sm:$0xff]   ;;  %v735_v6 = vld [vmem:[#allocation8 + $0x10] sm:$0xff]   ;;  %vm395_vm1 = vcmask 261120   ;;  %vm339_vm2 = vcmask 392192   ;;  %v942_v10 = vmov 64  }
  0x99   : > { %648 = vmatprep.mubr.msk.bf16.mxu1 %vm941_vm0, %v940_v0  ;;  %640 = vmatprep.mubr.msk.bf16.mxu0 %vm941_vm0, %v940_v0  ;;  %v307_v5 = vld [vmem:[%s257_s28] sm:$0xff]  ;;  %v308_v8 = vld [vmem:[%s266_s13] sm:$0xff]  ;;  %s943_s7 = smov 96   ;;  %s624_s30 = sshll.u32 %s996_s22, 7  ;;  %vm472_vm3 = vcmask 269568  }
  0x9a   : > { %635 = vmatpush3.bf16.msra.mxu0 %v731_v1  ;;  %645 = vmatpush3.bf16.msra.mxu1 %v732_v2  ;;  %v309_v7 = vpack.c.bf16 %v307_v5, %v307_v5  ;;  %v310_v9 = vpack.c.bf16 %v308_v8, %v308_v8  ;;  %v622_v15 = vld [vmem:[%s1258_s4] ss:$0 sm:$0xff]  ;;  %s305_s15 = scalar_lea.vmem [#allocation10], %s1178_s2  ;;  %s1210_s8 = scalar_lea.hbm %s1259_s5, %s624_s30 }
  0x9b   : > { %636 = vmatprep.subr.bf16.mxu0 %v940_v0  ;;  %646 = vmatprep.subr.bf16.mxu1 %v940_v0  ;;  %s488_s12 = sshll.u32 %s305_s15, 4  ;;  %s475_s10 = scalar_lea.sflag [#allocation4], %s1175_s17  ;;  %s1212_s12 = int_to_ptr.vmem [resolvable:$true] %s488_s12 }
  0x9c   : > { %730 = vset.pattern.permute.xlu0 %v942_v10  ;;  %s854_s22 = scalar_lea.vmem %s1212_s12, 128  ;;  %p1281_p13 = scmp.ne.s32.totalorder %s1273_s23, 0 }
  0x9d   : > { %p855_p2 = scmp.ne.s32.totalorder %s1212_s12, %s854_s22  ;;  %s944_s29 = smov [#allocation10]  }
  0x9e   : > { %637 = vmatpush3.bf16.msra.mxu0 %v733_v3  ;;  %647 = vmatpush3.bf16.msra.mxu1 %v734_v4  ;;  %s858_s2 = sshll.u32 %s944_s29, 4  ;;  %s859_s2 = int_to_ptr.vmem [resolvable:$false] %s858_s2 }
  0x9f   : > { %638 = vmatprep.subr.bf16.mxu0 %v940_v0  ;;  %p856_p6 = pnand %p855_p2, %p1281_p13  ;;  %s860_s9 = scalar_lea.vmem %s859_s2, 256 }
  0xa0   : > { %p861_p4 = scmp.lt.s32.totalorder %s1212_s12, %s859_s2  ;;  %p862_p5 = scmp.lt.s32.totalorder %s860_s9, %s854_s22 }
  0xa1   : > { %649 = vmatmul.mubr.msk.bf16.vlgmr.msra.gmra.mrb[0].mxu1 %vm395_vm1, %v309_v7  ;;  %p857_p10 = pneg %p856_p6 }
  0xa2   : > { %639 = vmatpush3.bf16.msra.mxu0 %v735_v6  ;;  %p863_p3 = por %p862_p5, %p861_p4 }
  0xa4   : > { %p864_p7 = pnand %p863_p3, %p857_p10 }
  0xa5   : > { %641 = vmatmul.mubr.msk.bf16.vlgmr.msra.gmra.mrb[0].mxu0 %vm339_vm2, %v310_v9 }
 0x174   : > { %v433_v11 = vpop.f32.mrb[0].mxu1 }
 0x175   : > { %v650_v12 = vpop.f32.mrb[1].mxu1 }
 0x176   : > { %v436_v13 = vpop.f32.mrb[2].mxu1 }
 0x177   : > { %v651_v16 = vpop.f32.mrb[3].mxu1 }
 0x178   : > { %v377_v14 = vpop.f32.mrb[0].mxu0 }
 0x179   : > { %v434_v17 = vadd.f32 %v433_v11, %v377_v14  ;;  %v642_v18 = vpop.f32.mrb[1].mxu0 }
 0x17a   : > { %v380_v19 = vpop.f32.mrb[2].mxu0 }
 0x17b   : > { %v446_v20 = vadd.f32 %v622_v15, %v434_v17  ;;  %v643_v21 = vpop.f32.mrb[3].mxu0 }
 0x17d   : > { %736 = vtanh.f32 %v446_v20 }
 0x187   : > { %v737_v22 = vpop.eup %736 }
 0x188   : > { %v448_v23 = vadd.f32 1.0, %v737_v22 }
 0x18a   : > { %v449_v24 = vmul.f32 0.5, %v448_v23 }
 0x18c   : > { %v456_v25 = vsub.f32 1.0, %v449_v24 }
 0x18e   : > { %459 = vperm.xlu0 %730, %v456_v25  }
 0x192   : > { %452 = vperm.xlu0 %730, %v449_v24  }
 0x20d   : > { %v460_v26 = vpop.permute.xlu0 %459 }
 0x20e   : > { %v462_v27 = vmul.f32 %v737_v22, %v460_v26 }
 0x210   : > { %464 = vrot.lane.b32.xlu1 %v462_v27, %s943_s7 }
 0x211   : > { %v453_v28 = vpop.permute.xlu0 %452 }
 0x212   : > { %v455_v29 = vmul.f32 %v737_v22, %v453_v28 }
 0x214   : > { %469 = vrot.lane.b32.xlu1 %v449_v24, %s943_s7 }
 0x282   : > { %v465_v30 = vpop.permute.xlu1 %464 }
 0x283   : > { %v467_v31 = vadd.f32 %v465_v30, %v455_v29 }
 0x285   : > { %468 = vst.msk [vmem:[%s305_s15] sm:$0xff] %vm395_vm1, %v467_v31 }
 0x286   : > { %v470_v32 = vpop.permute.xlu1 %469 }
 0x287   : > { %473 = vst.msk [vmem:[%s305_s15] sm:$0xff] %vm472_vm3, %v470_v32 }
 0x288   : > { %867 = shalt.err (!%p864_p7)
}
 0x289   : > { %s868_s17 = scalar_lea.hbm %s1210_s8, 128  ;;  %s872_s11 = scalar_lea.hbm %s1259_s5, 256 }
 0x28a   : > { %p869_p1 = scmp.ne.s32.totalorder %s1210_s8, %s868_s17  ;;  %p873_p0 = scmp.lt.u32.totalorder %s1210_s8, %s1259_s5 }
 0x28b   : > { %p874_p9 = scmp.lt.u32.totalorder %s872_s11, %s868_s17  ;;  %p876_p2 = scmp.lt.u32.totalorder %s868_s17, %s1210_s8 }
 0x28c   : > { %p870_p8 = pnand %p869_p1, %p1281_p13 }
 0x28d   : > { %p875_p12 = por %p874_p9, %p873_p0 }
 0x28e   : > { %p871_p11 = pneg %p870_p8 }
 0x28f   : > { %p877_p6 = por %p876_p2, %p875_p12 }
 0x291   : > { %p878_p10 = pnand %p877_p6, %p871_p11 }
 0x293   : > { %881 = shalt.err (!%p878_p10)
}
 0x294   : > { %664 = dma.vmem_to_hbm [thread:$0]  (%p1281_p13), %s1212_s12, 128, %s1210_s8, %s475_s10  }
 0x295 PF: > { %s500_s16 = sand.u32 1, %s920_s18   ;;  %p1282_p4 = scmp.ne.s32.totalorder %s1267_s25, 0 }
 0x296   : > { %p1283_p5 = scmp.ge.s32.totalorder %s932_s21, 2  ;;  %s501_s7 = scalar_lea.sflag [#allocation4], %s500_s16 }
 0x298   : > { %p681_p3 = pnand %p1283_p5, %p1282_p4 }
 0x29a   : > { %915 = dma.done.wait (!%p681_p3), %s501_s7, 128  }
 0x29b   : > { %917 = vsyncadd (!%p681_p3), %s501_s7, 4294967168  ;;  %p22_p7 = scmp.ge.s32.totalorder %s1085_s14, 4   ;;  %s1284_s18 = smov %s924_s19 }
 0x29c   : > { %s1285_s19 = smov %s928_s20  ;;  %s1286_s20 = smov %s1101_s27 }
 0x29d   : > { %s1287_s21 = smov %s1085_s14  ;;  %24 = sbr.rel (!%p22_p7) target bundleno = 11 (0xb), region = 106 }
 0x2a4   :  { %506 = vsyncpa [#allocation3], 1 }
 0x2a5   :  { %508 = vsyncpa [#allocation3 + $0x1], 1 }
 0x2a6   :  { %509 = vsyncpa [#allocation6], 1 }
 0x2a7   :  { %511 = vsyncpa [#allocation6 + $0x1], 1 }
 0x2a8   :  { %512 = vsyncpa [#allocation9], 1 }
 0x2a9   :  { %513 = vsyncpa [#allocation4], 1 }
 0x2aa   :  { %515 = vsyncpa [#allocation4 + $0x1], 1 }

</bundles_post_ra>
